<compile_context>
chip_gen: v5e
topology: v5e:2x2
jax: 0.10.0
libtpu: 0.0.40
codegen_flags: <defaults>
</compile_context>

<pallas_src>
import functools

import jax
import jax.numpy as jnp
from jax.experimental import pallas as pl
from jax.experimental.pallas import tpu as pltpu


# ---------------------------------------------------------------------------
# Tile helper: largest divisor of `n` that is <= target and `align`-aligned,
# falling back to the full dimension (always a legal block size).
# ---------------------------------------------------------------------------
def _pick_tile(n, target, align):
    if n <= target:
        return n
    for d in range(min(target, n), 0, -1):
        if n % d == 0 and d % align == 0:
            return d
    return n


# ---------------------------------------------------------------------------
# Kernel 1: tiled GEMM (+ optional bias)
# ---------------------------------------------------------------------------
def _matmul_kernel(x_ref, w_ref, o_ref, acc_ref):
    @pl.when(pl.program_id(2) == 0)
    def _():
        acc_ref[...] = jnp.zeros_like(acc_ref)

    acc_ref[...] += jnp.dot(x_ref[...], w_ref[...],
                            preferred_element_type=jnp.float32)

    @pl.when(pl.program_id(2) == pl.num_programs(2) - 1)
    def _():
        o_ref[...] = acc_ref[...].astype(o_ref.dtype)


def _matmul_bias_kernel(x_ref, w_ref, b_ref, o_ref, acc_ref):
    @pl.when(pl.program_id(2) == 0)
    def _():
        acc_ref[...] = jnp.zeros_like(acc_ref)

    acc_ref[...] += jnp.dot(x_ref[...], w_ref[...],
                            preferred_element_type=jnp.float32)

    @pl.when(pl.program_id(2) == pl.num_programs(2) - 1)
    def _():
        o_ref[...] = (acc_ref[...] + b_ref[...].astype(jnp.float32)).astype(o_ref.dtype)


def matmul(x, w, b=None, *, tm_target=256, tn_target=256, tk_target=512):
    """x: (M, K), w: (K, Nout), optional b: (Nout,) -> (M, Nout)."""
    M, K = x.shape
    K2, Nout = w.shape
    assert K == K2
    tm = _pick_tile(M, tm_target, 8)
    tn = _pick_tile(Nout, tn_target, 128)
    tk = _pick_tile(K, tk_target, 128)
    grid = (M // tm, Nout // tn, K // tk)

    x_spec = pl.BlockSpec((tm, tk), lambda i, j, k: (i, k))
    w_spec = pl.BlockSpec((tk, tn), lambda i, j, k: (k, j))
    o_spec = pl.BlockSpec((tm, tn), lambda i, j, k: (i, j))
    scratch = [pltpu.VMEM((tm, tn), jnp.float32)]
    cparams = pltpu.CompilerParams(
        dimension_semantics=("parallel", "parallel", "arbitrary"))
    out_shape = jax.ShapeDtypeStruct((M, Nout), x.dtype)

    if b is None:
        return pl.pallas_call(
            _matmul_kernel, out_shape=out_shape, grid=grid,
            in_specs=[x_spec, w_spec], out_specs=o_spec,
            scratch_shapes=scratch, compiler_params=cparams,
        )(x, w)

    b2 = b.reshape(1, Nout)
    b_spec = pl.BlockSpec((1, tn), lambda i, j, k: (0, j))
    return pl.pallas_call(
        _matmul_bias_kernel, out_shape=out_shape, grid=grid,
        in_specs=[x_spec, w_spec, b_spec], out_specs=o_spec,
        scratch_shapes=scratch, compiler_params=cparams,
    )(x, w, b2)


# ---------------------------------------------------------------------------
# Kernel 2: head-batched flash attention with fused q/k LayerNorm
# ---------------------------------------------------------------------------
def _flash_attention_kernel(params_ref, q_ref, k_ref, v_ref, o_ref,
                            qn_sc, m_sc, l_sc, acc_sc, *, num_heads, eps):
    H = num_heads
    tq, C = q_ref.shape
    tkv = k_ref.shape[0]
    D = C // H
    ki = pl.program_id(2)

    def layernorm(t, g, b):         # stats in fp32 (v5e has no bf16 VPU/EUP)
        mu = jnp.mean(t, axis=-1, keepdims=True)
        tc = t - mu
        var = jnp.mean(tc * tc, axis=-1, keepdims=True)
        return tc * jax.lax.rsqrt(var + eps) * g + b

    # (H, 1, D) affine params; `scale` is already folded into the q pair.
    qg = params_ref[0].reshape(H, 1, D)
    qb = params_ref[1].reshape(H, 1, D)
    kg = params_ref[2].reshape(H, 1, D)
    kb = params_ref[3].reshape(H, 1, D)

    @pl.when(ki == 0)
    def _():
        m_sc[...] = jnp.full_like(m_sc, -jnp.inf)
        l_sc[...] = jnp.zeros_like(l_sc)
        acc_sc[...] = jnp.zeros_like(acc_sc)
        # LayerNorm(q) * scale computed once per (batch, q-tile), reused for all kv tiles.
        q = q_ref[...].astype(jnp.float32).reshape(tq, H, D)
        q = jnp.transpose(q, (1, 0, 2))                       # (H, tq, D)
        qn_sc[...] = layernorm(q, qg, qb).astype(qn_sc.dtype)

    k = k_ref[...].astype(jnp.float32).reshape(tkv, H, D)
    k = jnp.transpose(k, (1, 0, 2))                           # (H, tkv, D)
    kn = layernorm(k, kg, kb).astype(k_ref.dtype)             # MXU operand in input dtype

    qn = qn_sc[...]
    # head-batched q @ k^T, contracting the last dims (no explicit k transpose)
    s = jax.lax.dot_general(
        qn, kn,
        dimension_numbers=(((2,), (2,)), ((0,), (0,))),
        preferred_element_type=jnp.float32)                   # (H, tq, tkv)

    m_prev = m_sc[...]
    m_new = jnp.maximum(m_prev, jnp.max(s, axis=-1, keepdims=True))
    alpha = jnp.exp(m_prev - m_new)
    p = jnp.exp(s - m_new)
    l_sc[...] = alpha * l_sc[...] + jnp.sum(p, axis=-1, keepdims=True)

    v = v_ref[...].reshape(tkv, H, D)
    v = jnp.transpose(v, (1, 0, 2))                           # (H, tkv, D)
    pv = jax.lax.dot_general(
        p.astype(v_ref.dtype), v,
        dimension_numbers=(((2,), (1,)), ((0,), (0,))),
        preferred_element_type=jnp.float32)                   # (H, tq, D)
    acc_sc[...] = alpha * acc_sc[...] + pv
    m_sc[...] = m_new

    @pl.when(ki == pl.num_programs(2) - 1)
    def _():
        o = acc_sc[...] * pl.reciprocal(l_sc[...], approx=True)   # (H, tq, D)
        o = jnp.transpose(o, (1, 0, 2)).reshape(tq, C)            # lane-dense (tq, H*D)
        o_ref[...] = o.astype(o_ref.dtype)


def mhsa(qkv_flat, ln_params, *, B, N, C, H, eps, out_dtype,
         tq_target=256, tkv_target=256):
    """qkv_flat: (B*N, 3C) qkv projection; ln_params: (4, C) packed LN affine params."""
    D = C // H
    tq = _pick_tile(N, tq_target, 8)
    tkv = _pick_tile(N, tkv_target, 8)
    grid = (B, N // tq, N // tkv)

    # Index q/k/v straight out of the fused (B, N, 3C) buffer when C is lane-aligned;
    # otherwise fall back to three pre-sliced (B, N, C) views (no transposes either way).
    fused = (C % 128 == 0)
    if fused:
        buf = qkv_flat.reshape(B, N, 3 * C)
        q_arr = k_arr = v_arr = buf
        q_col, k_col, v_col = 0, 1, 2
    else:
        q_arr = qkv_flat[:, 0 * C:1 * C].reshape(B, N, C)
        k_arr = qkv_flat[:, 1 * C:2 * C].reshape(B, N, C)
        v_arr = qkv_flat[:, 2 * C:3 * C].reshape(B, N, C)
        q_col = k_col = v_col = 0

    kern = functools.partial(_flash_attention_kernel, num_heads=H, eps=eps)
    in_specs = [
        pl.BlockSpec((4, C), lambda b, qi, ki: (0, 0)),                    # LN params (1 DMA)
        pl.BlockSpec((None, tq, C), lambda b, qi, ki: (b, qi, q_col)),     # q tile
        pl.BlockSpec((None, tkv, C), lambda b, qi, ki: (b, ki, k_col)),    # k tile
        pl.BlockSpec((None, tkv, C), lambda b, qi, ki: (b, ki, v_col)),    # v tile
    ]
    out_spec = pl.BlockSpec((None, tq, C), lambda b, qi, ki: (b, qi, 0))

    return pl.pallas_call(
        kern,
        out_shape=jax.ShapeDtypeStruct((B, N, C), out_dtype),
        grid=grid,
        in_specs=in_specs,
        out_specs=out_spec,
        scratch_shapes=[
            pltpu.VMEM((H, tq, D), qkv_flat.dtype),   # cached LayerNorm(q)*scale
            pltpu.VMEM((H, tq, 1), jnp.float32),      # running max m
            pltpu.VMEM((H, tq, 1), jnp.float32),      # running sum l
            pltpu.VMEM((H, tq, D), jnp.float32),      # output accumulator
        ],
        compiler_params=pltpu.CompilerParams(
            dimension_semantics=("parallel", "parallel", "arbitrary")),
    )(ln_params, q_arr, k_arr, v_arr)


# ---------------------------------------------------------------------------
# Full forward pass
# ---------------------------------------------------------------------------
def attention_forward(x, params, num_heads, eps=1e-5):
    B, N, C = x.shape
    H = num_heads
    D = C // H
    scale = D ** (-0.5)

    # qkv projection (qkv_bias=False -> no bias path, no fabricated zero bias)
    qkv = matmul(x.reshape(B * N, C), params["w_qkv"])        # (B*N, 3C)

    # Fold `scale` into the q-norm affine params and broadcast per-head LN params
    # into one lane-dense (4, C) block so the kernel fetches them with a single DMA.
    qg = jnp.tile(params["q_g"] * scale, H)
    qb = jnp.tile(params["q_b"] * scale, H)
    kg = jnp.tile(params["k_g"], H)
    kb = jnp.tile(params["k_b"], H)
    ln_params = jnp.stack([qg, qb, kg, kb]).astype(jnp.float32)   # (4, C)

    # Attention writes directly into (B, N, C); no HBM transposes around it.
    o = mhsa(qkv, ln_params, B=B, N=N, C=C, H=H, eps=eps, out_dtype=x.dtype)

    out = matmul(o.reshape(B * N, C), params["w_proj"], params["b_proj"])
    return out.reshape(B, N, C)


# ---------------------------------------------------------------------------
# Pure-JAX reference (mirrors the PyTorch forward)
# ---------------------------------------------------------------------------
def attention_reference(x, params, num_heads, eps=1e-5):
    B, N, C = x.shape
    H = num_heads
    D = C // H
    scale = D ** (-0.5)

    qkv = x @ params["w_qkv"]
    qkv = qkv.reshape(B, N, 3, H, D).transpose(2, 0, 3, 1, 4)
    q, k, v = qkv[0], qkv[1], qkv[2]

    def ln(t, g, b):
        mu = t.mean(-1, keepdims=True)
        var = ((t - mu) ** 2).mean(-1, keepdims=True)
        return (t - mu) / jnp.sqrt(var + eps) * g + b

    qn = ln(q, params["q_g"], params["q_b"]) * scale
    kn = ln(k, params["k_g"], params["k_b"])
    attn = qn @ jnp.swapaxes(kn, -2, -1)
    attn = jax.nn.softmax(attn, axis=-1)
    o = attn @ v
    o = o.transpose(0, 2, 1, 3).reshape(B, N, C)
    return o @ params["w_proj"] + params["b_proj"]


# ---------------------------------------------------------------------------
if __name__ == "__main__":
    B, N, C, H = 2, 16, 128, 8          # head_dim = 16, C lane-aligned (like ViT's 384/768)
    D = C // H

    key = jax.random.PRNGKey(0)
    kx, kw1, kw2, kb2, kg1, kb1, kg2, kb3 = jax.random.split(key, 8)

    x = jax.random.normal(kx, (B, N, C), dtype=jnp.float32)

    # nn.Linear(dim, 3*dim, bias=False): weight (3C, C); we store its transpose (C, 3C).
    w_qkv_t = (jax.random.normal(kw1, (3 * C, C), dtype=jnp.float32) * 0.02).T
    # nn.Linear(dim, dim): weight (C, C) + bias (C,)
    w_proj_t = (jax.random.normal(kw2, (C, C), dtype=jnp.float32) * 0.02).T
    b_proj = jax.random.normal(kb2, (C,), dtype=jnp.float32) * 0.02
    params = {
        "w_qkv": w_qkv_t,
        "w_proj": w_proj_t,
        "b_proj": b_proj,
        "q_g": 1.0 + 0.1 * jax.random.normal(kg1, (D,), dtype=jnp.float32),
        "q_b": 0.1 * jax.random.normal(kb1, (D,), dtype=jnp.float32),
        "k_g": 1.0 + 0.1 * jax.random.normal(kg2, (D,), dtype=jnp.float32),
        "k_b": 0.1 * jax.random.normal(kb3, (D,), dtype=jnp.float32),
    }

    out = jax.block_until_ready(attention_forward(x, params, num_heads=H))
    ref = attention_reference(x, params, num_heads=H)

    assert out.shape == (B, N, C)
    max_err = float(jnp.max(jnp.abs(out - ref)))
    assert jnp.allclose(out, ref, atol=2e-3, rtol=2e-3), \
        f"Pallas output mismatch vs reference (max abs err = {max_err})"

    print("KERNEL_OK")
</pallas_src>

<mosaic_0001>
module attributes {stable_mosaic.version = 11 : i64} {
  func.func @_matmul_kernel(%arg0: i32, %arg1: i32, %arg2: i32, %arg3: memref<32x128xf32, #tpu.memory_space<vmem>>, %arg4: memref<128x128xf32, #tpu.memory_space<vmem>>, %arg5: memref<32x128xf32, #tpu.memory_space<vmem>>, %arg6: memref<32x128xf32, #tpu.memory_space<vmem>>) attributes {dimension_semantics = [#tpu.dimension_semantics<parallel>, #tpu.dimension_semantics<parallel>, #tpu.dimension_semantics<arbitrary>], iteration_bounds = array<i64: 1, 3, 1>, scalar_prefetch = 0 : i64, scratch_operands = 1 : i64, tpu.core_type = #tpu.core_type<tc>, window_params = [{transform_indices = @transform_0, window_bounds = array<i64: 32, 128>}, {transform_indices = @transform_1, window_bounds = array<i64: 128, 128>}, {transform_indices = @transform_2, window_bounds = array<i64: 32, 128>}]} {
    %c0_i32 = arith.constant 0 : i32
    %0 = arith.cmpi eq, %arg2, %c0_i32 : i32
    %1 = arith.extui %0 : i1 to i32
    %c0_i32_0 = arith.constant 0 : i32
    %2 = arith.cmpi ne, %1, %c0_i32_0 : i32
    scf.if %2 {
      %cst_10 = arith.constant 0.000000e+00 : f32
      %12 = vector.broadcast %cst_10 : f32 to vector<32x128xf32>
      %c0_11 = arith.constant 0 : index
      %c0_12 = arith.constant 0 : index
      %13 = vector.load %arg6[%c0_11, %c0_12] : memref<32x128xf32, #tpu.memory_space<vmem>>, vector<32x128xf32>
      tpu.vector_store %arg6[%c0_11, %c0_12], %12 {strides = array<i32>} : memref<32x128xf32, #tpu.memory_space<vmem>>, vector<32x128xf32>,
    } else {
    }
    %c0 = arith.constant 0 : index
    %c0_1 = arith.constant 0 : index
    %3 = vector.load %arg6[%c0, %c0_1] : memref<32x128xf32, #tpu.memory_space<vmem>>, vector<32x128xf32>
    %c0_2 = arith.constant 0 : index
    %c0_3 = arith.constant 0 : index
    %4 = vector.load %arg3[%c0_2, %c0_3] : memref<32x128xf32, #tpu.memory_space<vmem>>, vector<32x128xf32>
    %c0_4 = arith.constant 0 : index
    %c0_5 = arith.constant 0 : index
    %5 = vector.load %arg4[%c0_4, %c0_5] : memref<128x128xf32, #tpu.memory_space<vmem>>, vector<128x128xf32>
    %cst = arith.constant dense<0.000000e+00> : vector<32x128xf32>
    %6 = tpu.matmul %4, %5, %cst {dimension_numbers = #tpu.dot_dimension_numbers<[1], [0], [0], [1], [0, 0, 1, 1], [], []>} : vector<32x128xf32>, vector<128x128xf32>, vector<32x128xf32> -> vector<32x128xf32>
    %7 = arith.addf %3, %6 : vector<32x128xf32>
    %c0_6 = arith.constant 0 : index
    %c0_7 = arith.constant 0 : index
    %8 = vector.load %arg6[%c0_6, %c0_7] : memref<32x128xf32, #tpu.memory_space<vmem>>, vector<32x128xf32>
    tpu.vector_store %arg6[%c0_6, %c0_7], %7 {strides = array<i32>} : memref<32x128xf32, #tpu.memory_space<vmem>>, vector<32x128xf32>,
    %c0_i32_8 = arith.constant 0 : i32
    %9 = arith.cmpi eq, %arg2, %c0_i32_8 : i32
    %10 = arith.extui %9 : i1 to i32
    %c0_i32_9 = arith.constant 0 : i32
    %11 = arith.cmpi ne, %10, %c0_i32_9 : i32
    scf.if %11 {
      %c0_10 = arith.constant 0 : index
      %c0_11 = arith.constant 0 : index
      %12 = vector.load %arg6[%c0_10, %c0_11] : memref<32x128xf32, #tpu.memory_space<vmem>>, vector<32x128xf32>
      %c0_12 = arith.constant 0 : index
      %c0_13 = arith.constant 0 : index
      %13 = vector.load %arg5[%c0_12, %c0_13] : memref<32x128xf32, #tpu.memory_space<vmem>>, vector<32x128xf32>
      tpu.vector_store %arg5[%c0_12, %c0_13], %12 {strides = array<i32>} : memref<32x128xf32, #tpu.memory_space<vmem>>, vector<32x128xf32>,
    } else {
    }
    return
  }
  func.func @transform_0(%arg0: i32, %arg1: i32, %arg2: i32) -> (i32, i32) {
    %c0_i32 = arith.constant 0 : i32
    return %arg0, %arg2 : i32, i32
  }
  func.func @transform_1(%arg0: i32, %arg1: i32, %arg2: i32) -> (i32, i32) {
    %c0_i32 = arith.constant 0 : i32
    return %arg2, %arg1 : i32, i32
  }
  func.func @transform_2(%arg0: i32, %arg1: i32, %arg2: i32) -> (i32, i32) {
    %c0_i32 = arith.constant 0 : i32
    return %arg0, %arg1 : i32, i32
  }
}

</mosaic_0001>

<bundles_post_ra>
// kernel: tpu_custom_call.1
= control target key start
LH: loop header
LB: loop body
LE: loop exit
PB: predicated region body
PF: predicated region fallthrough
CT: control target
= control target key end

     0   :  { %7 = vsyncpa [#allocation4], 0  ;;  %s905_s0 = inlined_call_operand.hbm [shape: f32[32,128], index: 0, kind: input, shape index: {}]   ;;  %s906_s1 = inlined_call_operand.hbm [shape: f32[128,384], index: 1, kind: input, shape index: {}]   ;;  %s907_s2 = inlined_call_operand.hbm [shape: f32[32,384], index: 2, kind: output, shape index: {}]  }
   0x1   :  { %8 = vsyncpa [#allocation7], 0 }
   0x2   :  { %10 = vsyncpa [#allocation7 + $0x1], 0 }
   0x3   :  { %11 = vsyncpa [#allocation5], 0 }
   0x4   :  { %13 = vsyncpa [#allocation5 + $0x1], 0  ;;  %s734_s9 = smov 0   ;;  %s736_s10 = smov 0  }
   0x5   :  { %s738_s11 = smov 0   ;;  %s740_s12 = smov 0  }
   0x6   :  { %s742_s13 = smov 0   ;;  %s744_s14 = smov 0  }
   0x7 LB: > { %s422_s15 = sadd.s32 4294967295, %s710_s14   ;;  %s423_s16 = sadd.s32 4294967294, %s710_s14   ;;  %s710_s14 = sphi %s744_s14, %s19_s14   ;;  %s706_s13 = sphi %s742_s13, %s921_s13   ;;  %s702_s12 = sphi %s740_s12, %s920_s12   ;;  %s698_s11 = sphi %s738_s11, %s919_s11   ;;  %s694_s10 = sphi %s736_s10, %s918_s10   ;;  %s690_s9 = sphi %s734_s9, %s917_s9  }
   0x8   : > { %p88_p0 = scmp.ne.s32.totalorder %s694_s10, %s690_s9  ;;  %p768_p1 = scmp.eq.s32.totalorder %s422_s15, 0 }
   0x9   : > { %p772_p2 = scmp.eq.s32.totalorder %s422_s15, 2  ;;  %p120_p3 = scmp.eq.s32.totalorder %s423_s16, 2 }
   0xa   : > { %p778_p4 = por %p768_p1, %p88_p0  ;;  %p424_p5 = scmp.ge.s32.totalorder %s710_s14, 1 }
   0xb   : > { %p783_p6 = por %p120_p3, %p88_p0  ;;  %p127_p7 = scmp.lt.s32.totalorder %s710_s14, 4 }
   0xc   : > { %s142_s23 = sshll.u32 %s905_s0, 4  ;;  %s712_s25 = smov [#allocation3]   ;;  %s143_s23 = int_to_ptr.hbm [resolvable:$true] %s142_s23 }
   0xd   : > { %p791_p8 = pnand %p424_p5, %p127_p7  ;;  %s144_s26 = sshll.u32 %s712_s25, 4  ;;  %s145_s26 = int_to_ptr.vmem [resolvable:$true] %s144_s26 }
   0xe   : > { %s908_s27 = smov 128   ;;  %s714_s28 = smov 8  }
   0xf   : > { %p493_p9 = pneg %p791_p8  ;;  %s34_s29 = sadd.s32 1, %s706_s13 }
  0x10   : > { %p36_p11 = scmp.ge.s32.totalorder %s34_s29, 3  ;;  %s75_s30 = sadd.s32 1, %s698_s11 }
  0x11   : > { %p494_p10 = pnand %p493_p9, %p768_p1  ;;  %p82_p12 = scmp.ne.s32.totalorder %s698_s11, %s694_s10 }
  0x12   : > { %p83_p13 = scmp.eq.s32.totalorder %s710_s14, 0  ;;  %s923_s29 = smov (%p36_p11, %s34_s29), 0 }
  0x13   : > { %496 = dma.hbm_to_vmem [thread:$0]  (!%p494_p10), %s143_s23, 512, %s145_s26, [#allocation4], %s908_s27, %s908_s27, %s714_s28  }
  0x14   : > { %p809_p0 = por %p83_p13, %p82_p12  ;;  %p815_p3 = por %p772_p2, %p82_p12 }
  0x15   : > { %s71_s5 = ssub.s32 %s706_s13, %s923_s29  ;;  %p506_p5 = scmp.lt.s32.totalorder %s710_s14, 3 }
  0x16   : > { %p73_p7 = scmp.eq.s32.totalorder %s71_s5, 0  ;;  %s158_s6 = sand.u32 1, %s698_s11  }
  0x17   : > { %s427_s7 = sshll.u32 %s158_s6, 7  ;;  %s428_s15 = sshll.u32 %s706_s13, 3 }
  0x18   : > { %s824_s8 = scalar_select %p73_p7, %s698_s11, %s75_s30  }
  0x19   : > { %s169_s22 = scalar_lea.hbm %s906_s1, %s428_s15  ;;  %s162_s23 = scalar_lea.vmem [#allocation6], %s427_s7 }
  0x1a   : > { %s172_s25 = sshll.u32 %s162_s23, 4  ;;  %s170_s18 = sshll.u32 %s169_s22, 4  ;;  %s173_s25 = int_to_ptr.vmem [resolvable:$true] %s172_s25  ;;  %s171_s18 = int_to_ptr.hbm [resolvable:$true] %s170_s18 }
  0x1b   : > { %p498_p2 = pnand %p506_p5, %p809_p0  ;;  %s159_s26 = scalar_lea.sflag [#allocation7], %s158_s6 }
  0x1c   : > { %s715_s27 = smov 384   ;;  %s916_s5 = smov 128  }
  0x1d   : > { %500 = dma.hbm_to_vmem [thread:$0]  (!%p498_p2), %s171_s18, 2048, %s173_s25, %s159_s26, %s715_s27, %s916_s5, %s714_s28  }
  0x1e   : > { %184 = sbr.rel (%p791_p8) target bundleno = 210 (0xd2), region = 28 }
  0x23   : > { %677 = dma.done.wait (%p768_p1), [#allocation4], 512  }
  0x24   : > { %679 = vsyncadd (%p768_p1), [#allocation4], 4294966784  ;;  %s841_s30 = sand.u32 1, %s694_s10  }
  0x25   : > { %s431_s3 = sshll.u32 %s841_s30, 7  ;;  %s192_s6 = scalar_lea.sflag [#allocation7], %s841_s30 }
  0x26   : > { %s845_s7 = scalar_lea.vmem [#allocation6], %s431_s3 }
  0x27   : > { %681 = dma.done.wait (%p778_p4), %s192_s6, 2048  }
  0x28   : > { %683 = vsyncadd (%p778_p4), %s192_s6, 4294965248  ;;  %v251_v0 = vld [vmem:[%s845_s7 + $0x78] sm:$0xff]  ;;  %v250_v1 = vld [vmem:[%s845_s7 + $0x70] sm:$0xff]  ;;  %s432_s17 = sshll.u32 %s841_s30, 5  ;;  %s434_s19 = sshll.u32 %s702_s12, 3 }
  0x29   : > { %438 = vmatpush.msra.mxu2 %v251_v0  ;;  %439 = vmatpush.msra.mxu3 %v251_v0  ;;  %v249_v2 = vld [vmem:[%s845_s7 + $0x68] sm:$0xff]  ;;  %v248_v3 = vld [vmem:[%s845_s7 + $0x60] sm:$0xff]  ;;  %v247_v4 = vld [vmem:[%s845_s7 + $0x58] sm:$0xff]  ;;  %s314_s28 = scalar_lea.hbm %s907_s2, %s434_s19  ;;  %s216_s15 = scalar_lea.vmem [#allocation8], %s432_s17 }
  0x2a   : > { %252 = vmatpush.msra.mxu0 %v251_v0  ;;  %437 = vmatpush.msra.mxu1 %v251_v0  ;;  %v246_v5 = vld [vmem:[%s845_s7 + $0x50] sm:$0xff]  ;;  %v245_v6 = vld [vmem:[%s845_s7 + $0x48] sm:$0xff]  ;;  %v244_v7 = vld [vmem:[%s845_s7 + $0x40] sm:$0xff]  ;;  %s315_s16 = sshll.u32 %s216_s15, 4  ;;  %s317_s21 = sshll.u32 %s314_s28, 4  ;;  %s316_s16 = int_to_ptr.vmem [resolvable:$true] %s315_s16  ;;  %s318_s21 = int_to_ptr.hbm [resolvable:$true] %s317_s21 }
  0x2b   : > { %441 = vmatpush.msra.mxu2 %v250_v1  ;;  %442 = vmatpush.msra.mxu3 %v250_v1  ;;  %v243_v8 = vld [vmem:[%s845_s7 + $0x38] sm:$0xff]  ;;  %v242_v9 = vld [vmem:[%s845_s7 + $0x30] sm:$0xff]  ;;  %v241_v10 = vld [vmem:[%s845_s7 + $0x28] sm:$0xff]  ;;  %s301_s22 = scalar_lea.sflag [#allocation5], %s841_s30  ;;  %s638_s12 = sshra.s32 %s318_s21, 4  ;;  %s639_s12 = int_to_ptr.hbm [resolvable:$true] %s638_s12 }
  0x2c   : > { %253 = vmatpush.msra.mxu0 %v250_v1  ;;  %440 = vmatpush.msra.mxu1 %v250_v1  ;;  %v240_v11 = vld [vmem:[%s845_s7 + $0x20] sm:$0xff]  ;;  %v239_v12 = vld [vmem:[%s845_s7 + $0x18] sm:$0xff]  ;;  %v238_v13 = vld [vmem:[%s845_s7 + $0x10] sm:$0xff]  ;;  %s640_s23 = scalar_lea.hbm %s639_s12, 32  ;;  %s644_s26 = scalar_lea.hbm %s907_s2, 96 }
  0x2d   : > { %444 = vmatpush.msra.mxu2 %v249_v2  ;;  %445 = vmatpush.msra.mxu3 %v249_v2  ;;  %v237_v14 = vld [vmem:[%s845_s7 + $0x8] sm:$0xff]  ;;  %v236_v15 = vld [vmem:[%s845_s7] sm:$0xff]  ;;  %v234_v16 = vld [vmem:[#allocation3 + $0x10] sm:$0xff]  ;;  %p641_p1 = scmp.ne.s32.totalorder %s639_s12, %s640_s23  ;;  %p645_p9 = scmp.lt.s32.totalorder %s639_s12, %s907_s2 }
  0x2e   : > { %254 = vmatpush.msra.mxu0 %v249_v2  ;;  %443 = vmatpush.msra.mxu1 %v249_v2  ;;  %v235_v17 = vld [vmem:[#allocation3 + $0x18] sm:$0xff]  ;;  %v232_v18 = vld [vmem:[#allocation3] sm:$0xff]  ;;  %v233_v19 = vld [vmem:[#allocation3 + $0x8] sm:$0xff]  ;;  %p646_p10 = scmp.lt.s32.totalorder %s644_s26, %s640_s23 }
  0x2f   : > { %447 = vmatpush.msra.mxu2 %v248_v3  ;;  %448 = vmatpush.msra.mxu3 %v248_v3  ;;  %p642_p4 = pnand %p641_p1, %p815_p3 }
  0x30   : > { %255 = vmatpush.msra.mxu0 %v248_v3  ;;  %446 = vmatpush.msra.mxu1 %v248_v3  ;;  %p647_p11 = por %p646_p10, %p645_p9 }
  0x31   : > { %450 = vmatpush.msra.mxu2 %v247_v4  ;;  %451 = vmatpush.msra.mxu3 %v247_v4  ;;  %p643_p8 = pneg %p642_p4 }
  0x32   : > { %256 = vmatpush.msra.mxu0 %v247_v4  ;;  %449 = vmatpush.msra.mxu1 %v247_v4 }
  0x33   : > { %453 = vmatpush.msra.mxu2 %v246_v5  ;;  %454 = vmatpush.msra.mxu3 %v246_v5  ;;  %p648_p12 = pnand %p647_p11, %p643_p8 }
  0x34   : > { %257 = vmatpush.msra.mxu0 %v246_v5  ;;  %452 = vmatpush.msra.mxu1 %v246_v5 }
  0x35   : > { %456 = vmatpush.msra.mxu2 %v245_v6  ;;  %457 = vmatpush.msra.mxu3 %v245_v6 }
  0x36   : > { %258 = vmatpush.msra.mxu0 %v245_v6  ;;  %455 = vmatpush.msra.mxu1 %v245_v6 }
  0x37   : > { %459 = vmatpush.msra.mxu2 %v244_v7  ;;  %460 = vmatpush.msra.mxu3 %v244_v7 }
  0x38   : > { %259 = vmatpush.msra.mxu0 %v244_v7  ;;  %458 = vmatpush.msra.mxu1 %v244_v7 }
  0x39   : > { %462 = vmatpush.msra.mxu2 %v243_v8  ;;  %463 = vmatpush.msra.mxu3 %v243_v8 }
  0x3a   : > { %260 = vmatpush.msra.mxu0 %v243_v8  ;;  %461 = vmatpush.msra.mxu1 %v243_v8 }
  0x3b   : > { %465 = vmatpush.msra.mxu2 %v242_v9  ;;  %466 = vmatpush.msra.mxu3 %v242_v9 }
  0x3c   : > { %261 = vmatpush.msra.mxu0 %v242_v9  ;;  %464 = vmatpush.msra.mxu1 %v242_v9 }
  0x3d   : > { %468 = vmatpush.msra.mxu2 %v241_v10  ;;  %469 = vmatpush.msra.mxu3 %v241_v10 }
  0x3e   : > { %262 = vmatpush.msra.mxu0 %v241_v10  ;;  %467 = vmatpush.msra.mxu1 %v241_v10 }
  0x3f   : > { %471 = vmatpush.msra.mxu2 %v240_v11  ;;  %472 = vmatpush.msra.mxu3 %v240_v11 }
  0x40   : > { %263 = vmatpush.msra.mxu0 %v240_v11  ;;  %470 = vmatpush.msra.mxu1 %v240_v11 }
  0x41   : > { %474 = vmatpush.msra.mxu2 %v239_v12  ;;  %475 = vmatpush.msra.mxu3 %v239_v12 }
  0x42   : > { %264 = vmatpush.msra.mxu0 %v239_v12  ;;  %473 = vmatpush.msra.mxu1 %v239_v12 }
  0x43   : > { %477 = vmatpush.msra.mxu2 %v238_v13  ;;  %478 = vmatpush.msra.mxu3 %v238_v13 }
  0x44   : > { %265 = vmatpush.msra.mxu0 %v238_v13  ;;  %476 = vmatpush.msra.mxu1 %v238_v13 }
  0x45   : > { %480 = vmatpush.msra.mxu2 %v237_v14  ;;  %481 = vmatpush.msra.mxu3 %v237_v14 }
  0x46   : > { %266 = vmatpush.msra.mxu0 %v237_v14  ;;  %479 = vmatpush.msra.mxu1 %v237_v14 }
  0x47   : > { %483 = vmatpush.msra.mxu2 %v236_v15  ;;  %484 = vmatpush.msra.mxu3 %v236_v15 }
  0x48   : > { %274 = vmatmul.f32.vlgmr.msra.gmra.mxu2 %v234_v16  ;;  %277 = vmatmul.f32.vlgmr.msra.gmra.mxu3 %v235_v17 }
  0x49   : > { %267 = vmatpush.msra.mxu0 %v236_v15  ;;  %482 = vmatpush.msra.mxu1 %v236_v15 }
  0x4a   : > { %268 = vmatmul.f32.vlgmr.msra.gmra.mxu0 %v232_v18  ;;  %271 = vmatmul.f32.vlgmr.msra.gmra.mxu1 %v233_v19 }
  0xc7   : > { %v269_v20 = vpop.f32.mrf.mxu0  ;;  %v272_v21 = vpop.f32.mrf.mxu1 }
  0xc8   : > { %296 = vst [vmem:[%s216_s15] sm:$0xff] %v269_v20 }
  0xc9   : > { %297 = vst [vmem:[%s216_s15 + $0x8] sm:$0xff] %v272_v21 }
  0xcb   : > { %v275_v22 = vpop.f32.mrf.mxu2  ;;  %v278_v23 = vpop.f32.mrf.mxu3 }
  0xcc   : > { %298 = vst [vmem:[%s216_s15 + $0x10] sm:$0xff] %v275_v22 }
  0xcd   : > { %299 = vst [vmem:[%s216_s15 + $0x18] sm:$0xff] %v278_v23 }
  0xce   : > { %651 = shalt.err (!%p648_p12)
}
  0xcf   : > { %s716_s30 = smov 128   ;;  %s717_s6 = smov 384  }
  0xd0   : > { %s718_s7 = smov 8  }
  0xd1   : > { %491 = dma.vmem_to_hbm [thread:$0]  (%p815_p3), %s316_s16, 512, %s318_s21, %s301_s22, %s716_s30, %s717_s6, %s718_s7  }
  0xd2 PF: > { %p508_p13 = scmp.ge.s32.totalorder %s710_s14, 2  ;;  %s332_s17 = sand.u32 1, %s690_s9  }
  0xd3   : > { %s333_s19 = scalar_lea.sflag [#allocation5], %s332_s17 }
  0xd4   : > { %p502_p0 = pnand %p508_p13, %p783_p6 }
  0xd6   : > { %p503_p5 = pneg %p502_p0 }
  0xd8   : > { %685 = dma.done.wait (%p503_p5), %s333_s19, 512  }
  0xd9   : > { %687 = vsyncadd (%p503_p5), %s333_s19, 4294966784  ;;  %s19_s14 = sadd.s32 1, %s710_s14   ;;  %s917_s9 = smov %s694_s10 }
  0xda   : > { %p16_p7 = scmp.ge.s32.totalorder %s19_s14, 5   ;;  %s918_s10 = smov %s698_s11 }
  0xdb   : > { %s919_s11 = smov %s824_s8  ;;  %s920_s12 = smov %s706_s13 }
  0xdc   : > { %s921_s13 = smov %s923_s29  ;;  %18 = sbr.rel (!%p16_p7) target bundleno = 7 (0x7), region = 87 }
  0xe1   :  { %339 = vsyncpa [#allocation4], 1 }
  0xe2   :  { %341 = vsyncpa [#allocation4 + $0x1], 1 }
  0xe3   :  { %342 = vsyncpa [#allocation7], 1 }
  0xe4   :  { %344 = vsyncpa [#allocation7 + $0x1], 1 }
  0xe5   :  { %345 = vsyncpa [#allocation5], 1 }
  0xe6   :  { %347 = vsyncpa [#allocation5 + $0x1], 1 }

</bundles_post_ra>
